<compile_context>
chip_gen: v6e
topology: v6e:2x2x1
jax: 0.10.0
libtpu: 0.0.40
codegen_flags: <defaults>
</compile_context>

<pallas_src>
import jax
import jax.numpy as jnp
from jax import lax
from jax.experimental import pallas as pl
from jax.experimental.pallas import tpu as pltpu


# ----------------------------- kernel ---------------------------------------

def _pointer_kernel(qw_ref, src_ref, mask_ref, out_ref):
    # qw_ref  : (BB, Q, D)  f32   query already projected by W (affine) or raw q
    # src_ref : (BB, S, D)  f32   source encodings straight from HBM (no pad/cast)
    # mask_ref: (BB, 1, S)  int8  nonzero == masked (as torch masked_fill)
    # out_ref : (BB, Q, S)  out dtype
    #
    # scores[b, q, s] = sum_d qw[b, q, d] * src[b, s, d]   (MXU, f32 accumulate)
    scores = jnp.einsum("bqd,bsd->bqs", qw_ref[...], src_ref[...],
                        preferred_element_type=jnp.float32)
    # NOTE: 'bqd,bsd->bqs' contracts the lane dim of src; if the lowered MLIR
    # (pl.lower_as_mlir) shows a per-step vxpose on src, pre-layout src as
    # (B, D, S) fused with its upstream producer and switch to 'bqd,bds->bqs'.

    masked = mask_ref[...] != 0                        # (BB, 1, S) bool
    scores = jnp.where(masked, -jnp.inf, scores)       # broadcast over Q

    # Softmax over source positions (f32 on VPU/EUP).  All-masked rows yield
    # NaN (max = -inf), intentionally matching the PyTorch behavior.
    m = jnp.max(scores, axis=-1, keepdims=True)
    e = jnp.exp(scores - m)
    denom = jnp.sum(e, axis=-1, keepdims=True)
    out_ref[...] = (e / denom).astype(out_ref.dtype)
    # TODO(synk): for production-sized S, add an S grid axis (last, "arbitrary")
    # with flash-style online softmax so src tiles stay ~2-4 MiB and the
    # pipeline stays full under v7x's 64 MiB per-TC VMEM.


# ----------------------------- wrapper ---------------------------------------

def _project_query(query_vec, weight, attention_type):
    """Reassociated query-side projection: softmax((q @ W) @ src^T)."""
    if attention_type == "affine":
        return jnp.einsum("bqh,hd->bqd",
                          query_vec.astype(jnp.float32),
                          jnp.asarray(weight, jnp.float32),
                          precision=lax.Precision.HIGHEST)
    # dot_prod: no projection (do NOT multiply by an identity matrix)
    return query_vec.astype(jnp.float32)


def _vmem_capacity_bytes():
    try:
        info = pltpu.get_tpu_info()
        cap = getattr(info, "vmem_capacity_bytes", None)
        if cap:
            return int(cap)
    except Exception:
        pass
    return 64 << 20   # conservative fallback: v7x per-TensorCore physical VMEM


def _min_grid_steps():
    """Keep >= 2 grid steps on dual-TC chips (v7x) so both cores get work."""
    try:
        kind = jax.devices()[0].device_kind.lower()
        if "v7" in kind:
            return 2
    except Exception:
        pass
    return 1   # v5e / v6e: single TensorCore, no reason to shrink blocks


def _block_bytes(bb, S, D, Q, out_bytes):
    """Double-buffered VMEM footprint of one grid step's blocks."""
    per_step = (bb * S * D * 4          # src  (f32)
                + bb * Q * D * 4        # qw   (f32)
                + bb * 1 * S * 1        # mask (int8)
                + bb * Q * S * out_bytes)
    return 2 * per_step


def _pick_batch_block(B, S, D, Q, out_bytes, budget, min_steps):
    """Largest divisor of B whose double-buffered blocks fit `budget`, keeping
    >= min_steps grid steps when possible (falls back to BB=1 otherwise)."""
    min_steps = min_steps if B >= min_steps else 1
    best = 1
    for bb in range(1, B + 1):
        if B % bb:
            continue
        if B // bb < min_steps:
            continue
        if _block_bytes(bb, S, D, Q, out_bytes) <= budget:
            best = bb
    return best


def pointer_net(src_encodings, src_token_mask, query_vec, weight=None,
                attention_type="affine", out_dtype=jnp.float32):
    """Pallas implementation of PointerNet.forward.

    src_encodings : (B, S, D_src) f32
    src_token_mask: (B, S) bool/int or None (nonzero/True == masked with -inf)
    query_vec     : (B, Q, H) f32
    weight        : (H, D_src) nn.Linear weight (affine only, bias-free)
    returns       : (B, Q, S) out_dtype, softmax over S
    """
    assert attention_type in ("affine", "dot_prod")
    B, S, Dsrc = src_encodings.shape
    _, Q, H = query_vec.shape
    if attention_type == "dot_prod":
        assert Dsrc == H, "dot_prod attention requires D_src == H"

    # Reassociated query-side projection: one small XLA GEMM, W never enters
    # the kernel, and the per-batch MXU work drops to Q*D*S flops.
    qw = _project_query(query_vec, weight, attention_type)        # (B, Q, Dsrc)

    # src goes in untouched: no wrapper pad/cast -> no extra HBM pass over it.
    src = src_encodings.astype(jnp.float32)

    if src_token_mask is None:
        mask = jnp.zeros((B, 1, S), jnp.int8)
    else:
        mask = src_token_mask.astype(jnp.int8)[:, None, :]         # (B, 1, S)

    out_bytes = jnp.dtype(out_dtype).itemsize
    capacity = _vmem_capacity_bytes()
    budget = int(capacity * 0.45)            # headroom for compiler scratch etc.
    BB = _pick_batch_block(B, S, Dsrc, Q, out_bytes, budget, _min_grid_steps())
    grid = (B // BB,)

    # Raise the scoped VMEM limit only when the blocks actually need it
    # (default scoped limit: 16 MiB on v5e, 32 MiB on v6e/v7x).
    needed = _block_bytes(BB, S, Dsrc, Q, out_bytes) + (2 << 20)
    vmem_limit = int(needed) if needed > (16 << 20) else None

    out = pl.pallas_call(
        _pointer_kernel,
        out_shape=jax.ShapeDtypeStruct((B, Q, S), out_dtype),
        grid_spec=pltpu.PrefetchScalarGridSpec(
            num_scalar_prefetch=0,
            grid=grid,
            in_specs=[
                pl.BlockSpec((BB, Q, Dsrc), lambda b: (b, 0, 0)),
                pl.BlockSpec((BB, S, Dsrc), lambda b: (b, 0, 0)),
                pl.BlockSpec((BB, 1, S), lambda b: (b, 0, 0)),
            ],
            out_specs=pl.BlockSpec((BB, Q, S), lambda b: (b, 0, 0)),
        ),
        compiler_params=pltpu.CompilerParams(
            dimension_semantics=("parallel",),
            vmem_limit_bytes=vmem_limit,
        ),
    )(qw, src, mask)
    return out


# ----------------------------- reference -------------------------------------

def _reference_f32(src_encodings, src_token_mask, query_vec, weight,
                   attention_type="affine"):
    """Literal pure-JAX mirror of the PyTorch forward (f32 end to end)."""
    if attention_type == "affine":
        src = jnp.einsum("bsd,hd->bsh", src_encodings, weight,
                         precision=lax.Precision.HIGHEST)
    else:
        src = src_encodings
    scores = jnp.einsum("bqh,bsh->bqs", query_vec, src,
                        precision=lax.Precision.HIGHEST)
    if src_token_mask is not None:
        scores = jnp.where(src_token_mask[:, None, :].astype(bool),
                           -jnp.inf, scores)
    return jax.nn.softmax(scores, axis=-1)


# ----------------------------- demo / checks ---------------------------------

if __name__ == "__main__":
    B, S, Dsrc, H, Q = 2, 16, 32, 32, 8

    key = jax.random.PRNGKey(0)
    k1, k2, k3, k4 = jax.random.split(key, 4)

    src_encodings = jax.random.normal(k1, (B, S, Dsrc), jnp.float32)
    query_vec = jax.random.normal(k2, (B, Q, H), jnp.float32)
    # nn.Linear(src_encoding_size, query_vec_size) weight: (H, D_src)
    weight = jax.random.normal(k3, (H, Dsrc), jnp.float32) / jnp.sqrt(Dsrc)
    # boolean mask; guarantee at least one unmasked token per row (avoid NaN rows)
    src_token_mask = jax.random.bernoulli(k4, 0.3, (B, S))
    src_token_mask = src_token_mask.at[:, 0].set(False)

    # ---- affine attention path ----
    out = pointer_net(src_encodings, src_token_mask, query_vec, weight,
                      attention_type="affine")
    out = jax.block_until_ready(out)
    assert out.shape == (B, Q, S)

    ref = _reference_f32(src_encodings, src_token_mask, query_vec, weight,
                         attention_type="affine")
    assert jnp.allclose(out, ref, rtol=5e-2, atol=5e-2), (
        float(jnp.max(jnp.abs(out - ref))))
    assert jnp.allclose(jnp.sum(out, axis=-1), 1.0, atol=1e-3)

    # ---- affine, no mask ----
    out_nm = jax.block_until_ready(
        pointer_net(src_encodings, None, query_vec, weight,
                    attention_type="affine"))
    ref_nm = _reference_f32(src_encodings, None, query_vec, weight,
                            attention_type="affine")
    assert jnp.allclose(out_nm, ref_nm, rtol=5e-2, atol=5e-2), (
        float(jnp.max(jnp.abs(out_nm - ref_nm))))

    # ---- dot_prod attention path (no projection; D_src == H) ----
    out_dp = jax.block_until_ready(
        pointer_net(src_encodings, src_token_mask, query_vec,
                    attention_type="dot_prod"))
    ref_dp = _reference_f32(src_encodings, src_token_mask, query_vec, None,
                            attention_type="dot_prod")
    assert jnp.allclose(out_dp, ref_dp, rtol=5e-2, atol=5e-2), (
        float(jnp.max(jnp.abs(out_dp - ref_dp))))

    print("KERNEL_OK")
</pallas_src>

<mosaic_0001>
module attributes {stable_mosaic.version = 11 : i64} {
  func.func @_pointer_kernel(%arg0: i32, %arg1: memref<2x8x32xf32, #tpu.memory_space<vmem>>, %arg2: memref<2x16x32xf32, #tpu.memory_space<vmem>>, %arg3: memref<2x1x16xi8, #tpu.memory_space<vmem>>, %arg4: memref<2x8x16xf32, #tpu.memory_space<vmem>>) attributes {dimension_semantics = [#tpu.dimension_semantics<parallel>], iteration_bounds = array<i64: 1>, scalar_prefetch = 0 : i64, scratch_operands = 0 : i64, tpu.core_type = #tpu.core_type<tc>, window_params = [{transform_indices = @transform_0, window_bounds = array<i64: 2, 8, 32>}, {transform_indices = @transform_1, window_bounds = array<i64: 2, 16, 32>}, {transform_indices = @transform_2, window_bounds = array<i64: 2, 1, 16>}, {transform_indices = @transform_3, window_bounds = array<i64: 2, 8, 16>}]} {
    %c0 = arith.constant 0 : index
    %c0_0 = arith.constant 0 : index
    %c0_1 = arith.constant 0 : index
    %0 = vector.load %arg1[%c0, %c0_0, %c0_1] : memref<2x8x32xf32, #tpu.memory_space<vmem>>, vector<2x8x32xf32>
    %c0_2 = arith.constant 0 : index
    %c0_3 = arith.constant 0 : index
    %c0_4 = arith.constant 0 : index
    %1 = vector.load %arg2[%c0_2, %c0_3, %c0_4] : memref<2x16x32xf32, #tpu.memory_space<vmem>>, vector<2x16x32xf32>
    "tpu.trace_start"() <{level = 10 : i32, message = "bqd,bsd->bqs"}> : () -> ()
    %cst = arith.constant dense<0.000000e+00> : vector<2x8x16xf32>
    %2 = tpu.matmul %0, %1, %cst {dimension_numbers = #tpu.dot_dimension_numbers<[2], [2], [1], [1], [0, 0, 0, 1, 1, 1], [0], [0]>} : vector<2x8x32xf32>, vector<2x16x32xf32>, vector<2x8x16xf32> -> vector<2x8x16xf32>
    "tpu.trace_stop"() : () -> ()
    %c0_5 = arith.constant 0 : index
    %c0_6 = arith.constant 0 : index
    %c0_7 = arith.constant 0 : index
    %3 = vector.load %arg3[%c0_5, %c0_6, %c0_7] : memref<2x1x16xi8, #tpu.memory_space<vmem>>, vector<2x1x16xi8>
    %c0_i8 = arith.constant 0 : i8
    %4 = vector.broadcast %c0_i8 : i8 to vector<2x1x16xi8>
    %5 = arith.cmpi ne, %3, %4 : vector<2x1x16xi8>
    %cst_8 = arith.constant 0xFF800000 : f32
    %6 = vector.shape_cast %5 : vector<2x1x16xi1> to vector<2x1x16xi1>
    %7 = vector.broadcast %6 : vector<2x1x16xi1> to vector<2x8x16xi1>
    %8 = vector.broadcast %cst_8 : f32 to vector<2x8x16xf32>
    %9 = arith.select %7, %8, %2 : vector<2x8x16xi1>, vector<2x8x16xf32>
    %cst_9 = arith.constant dense<0xFF800000> : vector<2x8xf32>
    %10 = vector.multi_reduction <maximumf>, %9, %cst_9 [2] : vector<2x8x16xf32> to vector<2x8xf32>
    %11 = vector.shape_cast %10 : vector<2x8xf32> to vector<2x8x1xf32>
    %12 = vector.broadcast %11 : vector<2x8x1xf32> to vector<2x8x16xf32>
    %13 = arith.subf %9, %12 : vector<2x8x16xf32>
    %14 = math.exp %13 : vector<2x8x16xf32>
    %cst_10 = arith.constant dense<0.000000e+00> : vector<2x8xf32>
    %15 = vector.multi_reduction <add>, %14, %cst_10 [2] : vector<2x8x16xf32> to vector<2x8xf32>
    %16 = vector.shape_cast %15 : vector<2x8xf32> to vector<2x8x1xf32>
    %17 = vector.broadcast %16 : vector<2x8x1xf32> to vector<2x8x16xf32>
    %18 = arith.divf %14, %17 : vector<2x8x16xf32>
    %c0_11 = arith.constant 0 : index
    %c0_12 = arith.constant 0 : index
    %c0_13 = arith.constant 0 : index
    %19 = vector.load %arg4[%c0_11, %c0_12, %c0_13] : memref<2x8x16xf32, #tpu.memory_space<vmem>>, vector<2x8x16xf32>
    tpu.vector_store %arg4[%c0_11, %c0_12, %c0_13], %18 {strides = array<i32>} : memref<2x8x16xf32, #tpu.memory_space<vmem>>, vector<2x8x16xf32>,
    return
  }
  func.func @transform_0(%arg0: i32) -> (i32, i32, i32) {
    %c0_i32 = arith.constant 0 : i32
    %c0_i32_0 = arith.constant 0 : i32
    %c0_i32_1 = arith.constant 0 : i32
    return %arg0, %c0_i32, %c0_i32_0 : i32, i32, i32
  }
  func.func @transform_1(%arg0: i32) -> (i32, i32, i32) {
    %c0_i32 = arith.constant 0 : i32
    %c0_i32_0 = arith.constant 0 : i32
    %c0_i32_1 = arith.constant 0 : i32
    return %arg0, %c0_i32, %c0_i32_0 : i32, i32, i32
  }
  func.func @transform_2(%arg0: i32) -> (i32, i32, i32) {
    %c0_i32 = arith.constant 0 : i32
    %c0_i32_0 = arith.constant 0 : i32
    %c0_i32_1 = arith.constant 0 : i32
    return %arg0, %c0_i32, %c0_i32_0 : i32, i32, i32
  }
  func.func @transform_3(%arg0: i32) -> (i32, i32, i32) {
    %c0_i32 = arith.constant 0 : i32
    %c0_i32_0 = arith.constant 0 : i32
    %c0_i32_1 = arith.constant 0 : i32
    return %arg0, %c0_i32, %c0_i32_0 : i32, i32, i32
  }
}

</mosaic_0001>

<bundles_post_ra>
// kernel: tpu_custom_call.1
= control target key start
LH: loop header
LB: loop body
LE: loop exit
PB: predicated region body
PF: predicated region fallthrough
CT: control target
= control target key end

     0   :  { %8 = vsyncpa [#allocation3], 0  ;;  %s443_s0 = inlined_call_operand.hbm [shape: f32[2,8,32], index: 0, kind: input, shape index: {}]   ;;  %s444_s1 = inlined_call_operand.hbm [shape: f32[2,16,32], index: 1, kind: input, shape index: {}]   ;;  %s445_s2 = inlined_call_operand.vmem [shape: s8[2,1,16], index: 2, kind: input, shape index: {}]   ;;  %s446_s3 = inlined_call_operand.hbm [shape: f32[2,8,16], index: 3, kind: output, shape index: {}]  }
   0x1   :  { %9 = vsyncpa [#allocation6], 0 }
   0x2   :  { %10 = vsyncpa [#allocation4], 0  ;;  %s385_s12 = smov [#allocation2]  }
   0x3   :  { %s16_s13 = sshll.u32 %s385_s12, 4  ;;  %s17_s13 = int_to_ptr.vmem [resolvable:$true] %s16_s13 }
   0x4   :  { %s327_s14 = scalar_lea.vmem %s17_s13, 256  ;;  %p332_p1 = scmp.lt.s32.totalorder %s17_s13, %s17_s13 }
   0x5   :  { %p328_p0 = scmp.ne.s32.totalorder %s17_s13, %s327_s14  ;;  %p333_p2 = scmp.lt.s32.totalorder %s327_s14, %s327_s14 }
   0x7   :  { %p334_p3 = por %p333_p2, %p332_p1 }
   0x9   :  { %p335_p4 = pnand %p334_p3, %p328_p0 }
   0xb   :  { %338 = shalt.err (!%p335_p4)
}
   0xc   :  { %s386_s15 = smov 128   ;;  %s387_s16 = smov 8  }
   0xd   :  { %22 = dma.hbm_to_vmem [thread:$0]  %s443_s0, 256, %s17_s13, [#allocation3], %s386_s15, %s386_s15, %s387_s16  }
   0xe   :  { %s388_s19 = smov [#allocation5]  }
   0xf   :  { %s28_s20 = sshll.u32 %s388_s19, 4  ;;  %s29_s20 = int_to_ptr.vmem [resolvable:$true] %s28_s20 }
  0x10   :  { %s347_s21 = scalar_lea.vmem %s29_s20, 512  ;;  %p352_p6 = scmp.lt.s32.totalorder %s29_s20, %s29_s20 }
  0x11   :  { %p348_p5 = scmp.ne.s32.totalorder %s29_s20, %s347_s21  ;;  %p353_p7 = scmp.lt.s32.totalorder %s347_s21, %s347_s21 }
  0x13   :  { %p354_p8 = por %p353_p7, %p352_p6 }
  0x15   :  { %p355_p9 = pnand %p354_p8, %p348_p5 }
  0x17   :  { %358 = shalt.err (!%p355_p9)
}
  0x18   :  { %34 = dma.hbm_to_vmem [thread:$0]  %s444_s1, 512, %s29_s20, [#allocation6], %s386_s15, %s386_s15, %s387_s16  }
  0x19   :  { %379 = dma.done.wait [#allocation3], 256  }
  0x1a   :  { %380 = vsyncadd [#allocation3], 4294967040 }
  0x1b   :  { %381 = dma.done.wait [#allocation6], 512  }
  0x1c   :  { %382 = vsyncadd [#allocation6], 4294966784  ;;  %v389_v0 = vmov 0.0   ;;  %vm390_vm0 = vmmov 0   ;;  %vm51_vm1 = vcmask 261120   ;;  %v48_v1 = vld [vmem:[#allocation5 + $0x8] sm:$0xff]  ;;  %v222_v12 = vlaneseq }
  0x1d   :  { %289 = vmatprep.subr.mxu0 %v389_v0  ;;  %296 = vmatprep.subr.mxu1 %v389_v0  ;;  %v50_v2 = vld [vmem:[#allocation5 + $0x18] sm:$0xff]  ;;  %v47_v3 = vld [vmem:[#allocation5] sm:$0xff]  ;;  %v49_v4 = vld [vmem:[#allocation5 + $0x10] sm:$0xff]  ;;  %v391_v9 = vmov 0   ;;  %vm234_vm8 = vcmask 130048  }
  0x1e   :  { %293 = vmatprep.mubr.msk.f32.mxu0 %vm390_vm0, %v389_v0  ;;  %300 = vmatprep.mubr.msk.f32.mxu1 %vm390_vm0, %v389_v0  ;;  %v45_v5 = vld [vmem:[#allocation2] sm:$0xff]  ;;  %v46_v6 = vld [vmem:[#allocation2 + $0x8] sm:$0xff]  ;;  %v223_v15 = vshrl.u32 %v222_v12, 7 }
  0x1f   :  { %290 = vmatpush3.xpose.msk.msra.mxu0 %vm51_vm1, %v48_v1  ;;  %297 = vmatpush3.xpose.msk.msra.mxu1 %vm51_vm1, %v50_v2  ;;  %v210_v7 = vld [vmem:[%s445_s2] sm:$0x1]  ;;  %v211_v8 = vld [vmem:[%s445_s2 + $0x1] sm:$0x1]  ;;  %s392_s2 = smov [#allocation7]  }
  0x20   :  { %291 = vmatprep.subr.mxu0 %v389_v0  ;;  %298 = vmatprep.subr.mxu1 %v389_v0  ;;  %vm212_vm2 = vnez %v210_v7  ;;  %vm213_vm3 = vnez %v211_v8  ;;  %v224_v16 = vsub.s32 0, %v223_v15  ;;  %s264_s26 = sshll.u32 %s392_s2, 4  ;;  %s265_s26 = int_to_ptr.vmem [resolvable:$true] %s264_s26 }
  0x21   :  { %v214_v10 = vsel %vm212_vm2, 16843009, %v391_v9  ;;  %v215_v11 = vsel %vm213_vm3, 16843009, %v391_v9  ;;  %s359_s27 = scalar_lea.vmem %s265_s26, 256  ;;  %p364_p11 = scmp.lt.s32.totalorder %s265_s26, %s265_s26 }
  0x22   :  { %v216_v13 = vunpack.c.0.s8 %v214_v10  ;;  %v217_v14 = vunpack.c.0.s8 %v215_v11  ;;  %p360_p10 = scmp.ne.s32.totalorder %s265_s26, %s359_s27  ;;  %p365_p12 = scmp.lt.s32.totalorder %s359_s27, %s359_s27 }
  0x23   :  { %292 = vmatpush3.xpose.msk.msra.mxu0 %vm51_vm1, %v47_v3  ;;  %299 = vmatpush3.xpose.msk.msra.mxu1 %vm51_vm1, %v49_v4 }
  0x24   :  { %vm218_vm4 = vcmp.ne.s32.totalorder %v216_v13, 0  ;;  %vm219_vm5 = vcmp.ne.s32.totalorder %v217_v14, 0  ;;  %p366_p13 = por %p365_p12, %p364_p11 }
  0x25   :  { %v220_v17 = vsel %vm218_vm4, 1, %v391_v9  ;;  %v221_v18 = vsel %vm219_vm5, 1, %v391_v9 }
  0x26   :  { %294 = vmatmul.mubr.msk.f32.vlgmr.msra.gmra.mxu0 %vm51_vm1, %v45_v5  ;;  %301 = vmatmul.mubr.msk.f32.vlgmr.msra.gmra.mxu1 %vm51_vm1, %v46_v6  ;;  %v225_v19 = vrot.slane %v220_v17, %v224_v16  ;;  %v229_v20 = vrot.slane %v221_v18, %v224_v16  ;;  %p367_p0 = pnand %p366_p13, %p360_p10 }
  0x28   :  { %vm230_vm6 = vcmp.eq.s32.totalorder %v225_v19, 1  ;;  %vm231_vm7 = vcmp.eq.s32.totalorder %v229_v20, 1 }
  0xe6   :  { %v127_v21 = vpop.f32.mrf.mxu0  ;;  %v206_v22 = vpop.f32.mrf.mxu1 }
  0xe7   :  { %v232_v23 = vsel %vm230_vm6, -inf, %v127_v21  ;;  %v233_v24 = vsel %vm231_vm7, -inf, %v206_v22 }
  0xe8   :  { %v295_v25 = vpop.f32.mrf.mxu0  ;;  %v235_v26 = vsel %vm234_vm8, %v232_v23, -inf  ;;  %v302_v27 = vpop.f32.mrf.mxu1  ;;  %v238_v28 = vsel %vm234_vm8, %v233_v24, -inf }
  0xe9   :  { %236 = vmax.xlane.f32.xlu0 %v235_v26 }
  0xed   :  { %239 = vmax.xlane.f32.xlu0 %v238_v28 }
 0x172   :  { %v237_v29 = vpop.xlane.xlu0 %236 }
 0x173   :  { %v241_v30 = vsub.f32 %v232_v23, %v237_v29 }
 0x175   :  { %v243_v31 = vmul.f32 1.442695, %v241_v30 }
 0x176   :  { %v240_v32 = vpop.xlane.xlu0 %239 }
 0x177   :  { %311 = vpow2.f32 %v243_v31  ;;  %v242_v33 = vsub.f32 %v233_v24, %v240_v32 }
 0x179   :  { %v245_v34 = vmul.f32 1.442695, %v242_v33 }
 0x17b   :  { %313 = vpow2.f32 %v245_v34 }
 0x184   :  { %v312_v35 = vpop.eup %311 }
 0x185   :  { %v247_v36 = vsel %vm234_vm8, %v312_v35, 0.0 }
 0x186   :  { %248 = vadd.xlane.f32.xlu1 %v247_v36 }
 0x188   :  { %v314_v37 = vpop.eup %313 }
 0x189   :  { %v250_v38 = vsel %vm234_vm8, %v314_v37, 0.0 }
 0x18a   :  { %251 = vadd.xlane.f32.xlu1 %v250_v38 }
 0x20f   :  { %v249_v39 = vpop.xlane.xlu1 %248 }
 0x210   :  { %315 = vrcp.f32 %v249_v39 }
 0x213   :  { %v252_v40 = vpop.xlane.xlu1 %251 }
 0x214   :  { %317 = vrcp.f32 %v252_v40 }
 0x21d   :  { %v316_v41 = vpop.eup %315 }
 0x21e   :  { %v254_v42 = vmul.f32 %v316_v41, %v312_v35 }
 0x220   :  { %257 = vst.msk [vmem:[#allocation7] sm:$0xff] %vm234_vm8, %v254_v42 }
 0x221   :  { %v318_v43 = vpop.eup %317 }
 0x222   :  { %v256_v44 = vmul.f32 %v318_v43, %v314_v37 }
 0x224   :  { %258 = vst.msk [vmem:[#allocation7 + $0x8] sm:$0xff] %vm234_vm8, %v256_v44 }
 0x225   :  { %370 = shalt.err (!%p367_p0)
}
 0x226   :  { %270 = dma.vmem_to_hbm [thread:$0]  %s265_s26, 256, %s446_s3, [#allocation4], %s386_s15, %s386_s15, %s387_s16  }
 0x227   :  { %383 = dma.done.wait [#allocation4], 256  }
 0x228   :  { %384 = vsyncadd [#allocation4], 4294967040 }
 0x229   :  { %274 = vsyncpa [#allocation3], 1 }
 0x22a   :  { %275 = vsyncpa [#allocation6], 1 }
 0x22b   :  { %276 = vsyncpa [#allocation4], 1 }

</bundles_post_ra>
